<compile_context>
chip_gen: v7x
topology: tpu7x:2x2x1
jax: 0.10.0
libtpu: 0.0.40
codegen_flags: <defaults>
</compile_context>

<pallas_src>
import functools

import jax
import jax.numpy as jnp
from jax.experimental import pallas as pl
from jax.experimental.pallas import tpu as pltpu


# ----------------------------------------------------------------------------
# Phase 1: per-channel batch statistics (training mode only).
# Grid = (C_tiles, N, HW_tiles); mean/var outputs are VMEM-resident
# accumulators across the (N, HW) reduction axes (same block index).
# Chan combine: keep running (mean, M2) per channel; finalize divides by count.
# ----------------------------------------------------------------------------
def _stats_kernel(x_ref, mean_ref, m2_ref, *,
                  hw_per_block, num_l, last_step, total_count):
    n_idx = pl.program_id(1)
    l_idx = pl.program_id(2)
    step = n_idx * num_l + l_idx          # position within the (N, HW) sweep

    @pl.when(step == 0)
    def _init():
        mean_ref[...] = jnp.zeros_like(mean_ref)
        m2_ref[...] = jnp.zeros_like(m2_ref)

    x = x_ref[0].astype(jnp.float32)                     # (c_tile, hw_tile)
    inv_nb = 1.0 / hw_per_block
    tile_mean = jnp.sum(x, axis=-1, keepdims=True) * inv_nb     # (c_tile, 1)
    centered = x - tile_mean
    tile_m2 = jnp.sum(centered * centered, axis=-1, keepdims=True)

    # Chan parallel-variance combine with the running accumulator.
    n_a = step.astype(jnp.float32) * hw_per_block
    n_tot = n_a + hw_per_block
    mean_a = mean_ref[...]
    delta = tile_mean - mean_a
    mean_ref[...] = mean_a + delta * (hw_per_block / n_tot)
    m2_ref[...] = m2_ref[...] + tile_m2 + (delta * delta) * (n_a * hw_per_block / n_tot)

    @pl.when(step == last_step)
    def _finalize():
        # biased variance (used for normalization, matching torch.batch_norm)
        m2_ref[...] = m2_ref[...] * (1.0 / total_count)


# ----------------------------------------------------------------------------
# Phase 2: y = x * scale + shift, then activation.  scale/shift are per-channel
# vectors precomputed in plain JAX (gamma * rsqrt(var+eps), bias - mean*that).
# ----------------------------------------------------------------------------
def _norm_act_kernel(x_ref, scale_ref, shift_ref, o_ref, *,
                     activation, activation_param):
    x = x_ref[...].astype(jnp.float32)          # (1, c_tile, hw_tile)
    scale = scale_ref[...][None]                # (1, c_tile, 1)
    shift = shift_ref[...][None]

    y = x * scale + shift

    if activation == "leaky_relu":
        y = jnp.where(y >= 0, y, y * activation_param)
    elif activation == "relu":
        y = jnp.maximum(y, 0.0)
    elif activation == "elu":
        y = jnp.where(y >= 0, y, activation_param * (jnp.exp(y) - 1.0))
    elif activation == "identity":
        pass
    else:
        raise RuntimeError("Unknown activation function {}".format(activation))

    o_ref[...] = y.astype(o_ref.dtype)


# ----------------------------------------------------------------------------
# Tile selection: lane tiles multiple of 128 (dividing HW), channel tiles a
# multiple of 8 (or full C), keeping each x tile around <= 1 MiB so the
# double-buffered working set stays far under VMEM on all generations
# (including v7x's 64 MiB).
# ----------------------------------------------------------------------------
def _pick_tiles(C, HW, itemsize):
    if C % 8 == 0:
        c_tile = min(C, 128)
        while C % c_tile:
            c_tile -= 8
    else:
        c_tile = C                      # full-dim escape hatch
    if HW % 128 != 0:
        hw_tile = HW                    # TODO(synk): ragged HW tiling
    else:
        budget = max(128, (1 << 20) // max(c_tile * itemsize, 1))
        hw_tile = min(HW, 2048, (budget // 128) * 128)
        hw_tile = max(hw_tile, 128)
        while HW % hw_tile:
            hw_tile -= 128
    return c_tile, hw_tile


@functools.partial(
    jax.jit,
    static_argnames=("training", "momentum", "eps", "activation",
                     "activation_param"))
def inplace_abn_sync(x, weight, bias, running_mean, running_var, *,
                     training=True, momentum=0.1, eps=1e-5,
                     activation="leaky_relu", activation_param=0.01):
    """Forward of InPlaceABNSync.  x is NCHW.  Returns (y, new_rm, new_rv)."""
    N, C, H, W = x.shape
    HW = H * W
    x3 = x.reshape(N, C, HW)                       # free reshape, no transpose

    c_tile, hw_tile = _pick_tiles(C, HW, jnp.dtype(x.dtype).itemsize)
    num_c = C // c_tile
    num_l = HW // hw_tile
    grid = (num_c, N, num_l)

    x_spec = pl.BlockSpec((1, c_tile, hw_tile), lambda c, n, l: (n, c, l))
    cvec_spec = pl.BlockSpec((c_tile, 1), lambda c, n, l: (c, 0))
    vmem_limit = 32 * 1024 * 1024

    if training:
        stats_kernel = functools.partial(
            _stats_kernel,
            hw_per_block=float(hw_tile),
            num_l=num_l,
            last_step=N * num_l - 1,
            total_count=float(N * HW))
        mean2, var2 = pl.pallas_call(
            stats_kernel,
            out_shape=(jax.ShapeDtypeStruct((C, 1), jnp.float32),
                       jax.ShapeDtypeStruct((C, 1), jnp.float32)),
            grid=grid,
            in_specs=[x_spec],
            out_specs=(cvec_spec, cvec_spec),
            compiler_params=pltpu.CompilerParams(
                dimension_semantics=("parallel", "arbitrary", "arbitrary"),
                vmem_limit_bytes=vmem_limit),
        )(x3)
        mean = mean2[:, 0]
        var = var2[:, 0]
    else:
        mean = running_mean.astype(jnp.float32)
        var = running_var.astype(jnp.float32)

    # Per-channel affine folded to one FMA per element (inplace_abn uses
    # gamma = |weight| + eps to keep the transform invertible).
    gamma = jnp.abs(weight.astype(jnp.float32)) + eps
    inv_std = jax.lax.rsqrt(var + eps)
    scale = gamma * inv_std
    shift = bias.astype(jnp.float32) - mean * scale

    norm_kernel = functools.partial(
        _norm_act_kernel,
        activation=activation,
        activation_param=float(activation_param))

    y3 = pl.pallas_call(
        norm_kernel,
        out_shape=jax.ShapeDtypeStruct((N, C, HW), x.dtype),
        grid=grid,
        in_specs=[x_spec, cvec_spec, cvec_spec],
        out_specs=x_spec,
        input_output_aliases={0: 0},     # "in-place": y reuses x's buffer
        compiler_params=pltpu.CompilerParams(
            dimension_semantics=("parallel", "parallel", "parallel"),
            vmem_limit_bytes=vmem_limit),
    )(x3, scale.reshape(C, 1), shift.reshape(C, 1))

    y = y3.reshape(N, C, H, W)

    if training:
        count = float(N * HW)
        unbiased = var * (count / max(count - 1.0, 1.0))
        new_rm = (1.0 - momentum) * running_mean + momentum * mean
        new_rv = (1.0 - momentum) * running_var + momentum * unbiased
    else:
        new_rm, new_rv = running_mean, running_var

    return y, new_rm, new_rv


class InPlaceABNSyncPallas:
    """Minimal JAX stand-in for the PyTorch InPlaceABNSync module (forward)."""

    def __init__(self, num_features, eps=1e-5, momentum=0.1, affine=True,
                 activation="leaky_relu", activation_param=0.01):
        self.num_features = num_features
        self.eps = eps
        self.momentum = momentum
        self.affine = affine
        self.activation = activation
        self.activation_param = activation_param
        self.training = True
        # deterministic init, identical to reset_parameters()
        self.weight = jnp.ones((num_features,), jnp.float32)
        self.bias = jnp.zeros((num_features,), jnp.float32)
        self.running_mean = jnp.zeros((num_features,), jnp.float32)
        self.running_var = jnp.ones((num_features,), jnp.float32)

    def __call__(self, x):
        y, self.running_mean, self.running_var = inplace_abn_sync(
            x, self.weight, self.bias, self.running_mean, self.running_var,
            training=self.training, momentum=self.momentum, eps=self.eps,
            activation=self.activation,
            activation_param=self.activation_param)
        return y


def _reference_forward(x, weight, bias, eps, slope):
    mean = x.mean(axis=(0, 2, 3))
    var = ((x - mean[None, :, None, None]) ** 2).mean(axis=(0, 2, 3))
    gamma = jnp.abs(weight) + eps
    xhat = (x - mean[None, :, None, None]) * jax.lax.rsqrt(
        var[None, :, None, None] + eps)
    y = xhat * gamma[None, :, None, None] + bias[None, :, None, None]
    return jnp.where(y >= 0, y, y * slope)


if __name__ == "__main__":
    key = jax.random.PRNGKey(0)
    N, C, H, W = 2, 4, 16, 16            # PyTorch NCHW input
    x = 2.0 * jax.random.normal(key, (N, C, H, W), dtype=jnp.float32) + 3.0

    abn = InPlaceABNSyncPallas(num_features=C)

    # Training-mode forward (batch statistics).
    y = abn(x)
    jax.block_until_ready(y)
    assert y.shape == (N, C, H, W)
    assert jnp.all(jnp.isfinite(y))

    y_ref = _reference_forward(x, abn.weight, abn.bias, abn.eps,
                               abn.activation_param)
    assert jnp.allclose(y, y_ref, rtol=1e-4, atol=1e-4), \
        float(jnp.max(jnp.abs(y - y_ref)))

    # Eval-mode forward (running statistics, no stats kernel).
    abn.training = False
    y_eval = abn(x)
    jax.block_until_ready(y_eval)
    assert jnp.all(jnp.isfinite(y_eval))

    print("KERNEL_OK")
</pallas_src>

<mosaic_0001>
module attributes {stable_mosaic.version = 11 : i64} {
  func.func @_stats_kernel(%arg0: i32, %arg1: i32, %arg2: i32, %arg3: memref<1x4x256xf32, #tpu.memory_space<vmem>>, %arg4: memref<4x1xf32, #tpu.memory_space<vmem>>, %arg5: memref<4x1xf32, #tpu.memory_space<vmem>>) attributes {dimension_semantics = [#tpu.dimension_semantics<parallel>, #tpu.dimension_semantics<arbitrary>, #tpu.dimension_semantics<arbitrary>], iteration_bounds = array<i64: 1, 2, 1>, scalar_prefetch = 0 : i64, scratch_operands = 0 : i64, tpu.core_type = #tpu.core_type<tc>, window_params = [{transform_indices = @transform_0, window_bounds = array<i64: 1, 4, 256>}, {transform_indices = @transform_1, window_bounds = array<i64: 4, 1>}, {transform_indices = @transform_2, window_bounds = array<i64: 4, 1>}]} {
    %c1_i32 = arith.constant 1 : i32
    %0 = arith.muli %arg1, %c1_i32 : i32
    %1 = arith.addi %0, %arg2 : i32
    %c0_i32 = arith.constant 0 : i32
    %2 = arith.cmpi eq, %1, %c0_i32 : i32
    %3 = arith.extui %2 : i1 to i32
    %c0_i32_0 = arith.constant 0 : i32
    %4 = arith.cmpi ne, %3, %c0_i32_0 : i32
    scf.if %4 {
      %cst_19 = arith.constant 0.000000e+00 : f32
      %38 = vector.broadcast %cst_19 : f32 to vector<4x1xf32>
      %c0_20 = arith.constant 0 : index
      %c0_21 = arith.constant 0 : index
      %39 = vector.load %arg4[%c0_20, %c0_21] : memref<4x1xf32, #tpu.memory_space<vmem>>, vector<4x1xf32>
      tpu.vector_store %arg4[%c0_20, %c0_21], %38 {strides = array<i32>} : memref<4x1xf32, #tpu.memory_space<vmem>>, vector<4x1xf32>,
      %cst_22 = arith.constant 0.000000e+00 : f32
      %40 = vector.broadcast %cst_22 : f32 to vector<4x1xf32>
      %c0_23 = arith.constant 0 : index
      %c0_24 = arith.constant 0 : index
      %41 = vector.load %arg5[%c0_23, %c0_24] : memref<4x1xf32, #tpu.memory_space<vmem>>, vector<4x1xf32>
      tpu.vector_store %arg5[%c0_23, %c0_24], %40 {strides = array<i32>} : memref<4x1xf32, #tpu.memory_space<vmem>>, vector<4x1xf32>,
    } else {
    }
    %c0 = arith.constant 0 : index
    %c0_1 = arith.constant 0 : index
    %c0_2 = arith.constant 0 : index
    %5 = vector.load %arg3[%c0, %c0_1, %c0_2] : memref<1x4x256xf32, #tpu.memory_space<vmem>>, vector<1x4x256xf32>
    %6 = vector.shape_cast %5 : vector<1x4x256xf32> to vector<4x256xf32>
    %cst = arith.constant dense<0.000000e+00> : vector<4xf32>
    %7 = vector.multi_reduction <add>, %6, %cst [1] : vector<4x256xf32> to vector<4xf32>
    %8 = vector.shape_cast %7 : vector<4xf32> to vector<4x1xf32>
    %cst_3 = arith.constant 3.906250e-03 : f32
    %9 = vector.broadcast %cst_3 : f32 to vector<4x1xf32>
    %10 = arith.mulf %8, %9 : vector<4x1xf32>
    %11 = vector.broadcast %10 : vector<4x1xf32> to vector<4x256xf32>
    %12 = arith.subf %6, %11 : vector<4x256xf32>
    %13 = arith.mulf %12, %12 : vector<4x256xf32>
    %cst_4 = arith.constant dense<0.000000e+00> : vector<4xf32>
    %14 = vector.multi_reduction <add>, %13, %cst_4 [1] : vector<4x256xf32> to vector<4xf32>
    %15 = vector.shape_cast %14 : vector<4xf32> to vector<4x1xf32>
    %16 = arith.sitofp %1 : i32 to f32
    %cst_5 = arith.constant 2.560000e+02 : f32
    %17 = arith.mulf %16, %cst_5 : f32
    %cst_6 = arith.constant 2.560000e+02 : f32
    %18 = arith.addf %17, %cst_6 : f32
    %c0_7 = arith.constant 0 : index
    %c0_8 = arith.constant 0 : index
    %19 = vector.load %arg4[%c0_7, %c0_8] : memref<4x1xf32, #tpu.memory_space<vmem>>, vector<4x1xf32>
    %20 = arith.subf %10, %19 : vector<4x1xf32>
    %cst_9 = arith.constant 2.560000e+02 : f32
    %21 = arith.divf %cst_9, %18 : f32
    %22 = vector.broadcast %21 : f32 to vector<4x1xf32>
    %23 = arith.mulf %20, %22 : vector<4x1xf32>
    %24 = arith.addf %19, %23 : vector<4x1xf32>
    %c0_10 = arith.constant 0 : index
    %c0_11 = arith.constant 0 : index
    %25 = vector.load %arg4[%c0_10, %c0_11] : memref<4x1xf32, #tpu.memory_space<vmem>>, vector<4x1xf32>
    tpu.vector_store %arg4[%c0_10, %c0_11], %24 {strides = array<i32>} : memref<4x1xf32, #tpu.memory_space<vmem>>, vector<4x1xf32>,
    %c0_12 = arith.constant 0 : index
    %c0_13 = arith.constant 0 : index
    %26 = vector.load %arg5[%c0_12, %c0_13] : memref<4x1xf32, #tpu.memory_space<vmem>>, vector<4x1xf32>
    %27 = arith.addf %26, %15 : vector<4x1xf32>
    %28 = arith.mulf %20, %20 : vector<4x1xf32>
    %cst_14 = arith.constant 2.560000e+02 : f32
    %29 = arith.mulf %17, %cst_14 : f32
    %30 = arith.divf %29, %18 : f32
    %31 = vector.broadcast %30 : f32 to vector<4x1xf32>
    %32 = arith.mulf %28, %31 : vector<4x1xf32>
    %33 = arith.addf %27, %32 : vector<4x1xf32>
    %c0_15 = arith.constant 0 : index
    %c0_16 = arith.constant 0 : index
    %34 = vector.load %arg5[%c0_15, %c0_16] : memref<4x1xf32, #tpu.memory_space<vmem>>, vector<4x1xf32>
    tpu.vector_store %arg5[%c0_15, %c0_16], %33 {strides = array<i32>} : memref<4x1xf32, #tpu.memory_space<vmem>>, vector<4x1xf32>,
    %c1_i32_17 = arith.constant 1 : i32
    %35 = arith.cmpi eq, %1, %c1_i32_17 : i32
    %36 = arith.extui %35 : i1 to i32
    %c0_i32_18 = arith.constant 0 : i32
    %37 = arith.cmpi ne, %36, %c0_i32_18 : i32
    scf.if %37 {
      %c0_19 = arith.constant 0 : index
      %c0_20 = arith.constant 0 : index
      %38 = vector.load %arg5[%c0_19, %c0_20] : memref<4x1xf32, #tpu.memory_space<vmem>>, vector<4x1xf32>
      %cst_21 = arith.constant 0.001953125 : f32
      %39 = vector.broadcast %cst_21 : f32 to vector<4x1xf32>
      %40 = arith.mulf %38, %39 : vector<4x1xf32>
      %c0_22 = arith.constant 0 : index
      %c0_23 = arith.constant 0 : index
      %41 = vector.load %arg5[%c0_22, %c0_23] : memref<4x1xf32, #tpu.memory_space<vmem>>, vector<4x1xf32>
      tpu.vector_store %arg5[%c0_22, %c0_23], %40 {strides = array<i32>} : memref<4x1xf32, #tpu.memory_space<vmem>>, vector<4x1xf32>,
    } else {
    }
    return
  }
  func.func @transform_0(%arg0: i32, %arg1: i32, %arg2: i32) -> (i32, i32, i32) {
    %c0_i32 = arith.constant 0 : i32
    return %arg1, %arg0, %arg2 : i32, i32, i32
  }
  func.func @transform_1(%arg0: i32, %arg1: i32, %arg2: i32) -> (i32, i32) {
    %c0_i32 = arith.constant 0 : i32
    %c0_i32_0 = arith.constant 0 : i32
    return %arg0, %c0_i32 : i32, i32
  }
  func.func @transform_2(%arg0: i32, %arg1: i32, %arg2: i32) -> (i32, i32) {
    %c0_i32 = arith.constant 0 : i32
    %c0_i32_0 = arith.constant 0 : i32
    return %arg0, %c0_i32 : i32, i32
  }
}

module attributes {stable_mosaic.version = 11 : i64} {
  func.func @_norm_act_kernel(%arg0: i32, %arg1: i32, %arg2: i32, %arg3: memref<1x4x256xf32, #tpu.memory_space<vmem>>, %arg4: memref<4x1xf32, #tpu.memory_space<vmem>>, %arg5: memref<4x1xf32, #tpu.memory_space<vmem>>, %arg6: memref<1x4x256xf32, #tpu.memory_space<vmem>>) attributes {dimension_semantics = [#tpu.dimension_semantics<parallel>, #tpu.dimension_semantics<parallel>, #tpu.dimension_semantics<parallel>], iteration_bounds = array<i64: 1, 2, 1>, scalar_prefetch = 0 : i64, scratch_operands = 0 : i64, tpu.core_type = #tpu.core_type<tc>, window_params = [{transform_indices = @transform_0, window_bounds = array<i64: 1, 4, 256>}, {transform_indices = @transform_1, window_bounds = array<i64: 4, 1>}, {transform_indices = @transform_2, window_bounds = array<i64: 4, 1>}, {transform_indices = @transform_3, window_bounds = array<i64: 1, 4, 256>}]} {
    %c0 = arith.constant 0 : index
    %c0_0 = arith.constant 0 : index
    %c0_1 = arith.constant 0 : index
    %0 = vector.load %arg3[%c0, %c0_0, %c0_1] : memref<1x4x256xf32, #tpu.memory_space<vmem>>, vector<1x4x256xf32>
    %c0_2 = arith.constant 0 : index
    %c0_3 = arith.constant 0 : index
    %1 = vector.load %arg4[%c0_2, %c0_3] : memref<4x1xf32, #tpu.memory_space<vmem>>, vector<4x1xf32>
    %2 = vector.shape_cast %1 : vector<4x1xf32> to vector<1x4x1xf32>
    %c0_4 = arith.constant 0 : index
    %c0_5 = arith.constant 0 : index
    %3 = vector.load %arg5[%c0_4, %c0_5] : memref<4x1xf32, #tpu.memory_space<vmem>>, vector<4x1xf32>
    %4 = vector.shape_cast %3 : vector<4x1xf32> to vector<1x4x1xf32>
    %5 = vector.broadcast %2 : vector<1x4x1xf32> to vector<1x4x256xf32>
    %6 = arith.mulf %0, %5 : vector<1x4x256xf32>
    %7 = vector.broadcast %4 : vector<1x4x1xf32> to vector<1x4x256xf32>
    %8 = arith.addf %6, %7 : vector<1x4x256xf32>
    %cst = arith.constant 0.000000e+00 : f32
    %9 = vector.broadcast %cst : f32 to vector<1x4x256xf32>
    %10 = arith.cmpf oge, %8, %9 : vector<1x4x256xf32>
    %cst_6 = arith.constant 0.00999999977 : f32
    %11 = vector.broadcast %cst_6 : f32 to vector<1x4x256xf32>
    %12 = arith.mulf %8, %11 : vector<1x4x256xf32>
    %13 = arith.select %10, %8, %12 : vector<1x4x256xi1>, vector<1x4x256xf32>
    %c0_7 = arith.constant 0 : index
    %c0_8 = arith.constant 0 : index
    %c0_9 = arith.constant 0 : index
    %14 = vector.load %arg6[%c0_7, %c0_8, %c0_9] : memref<1x4x256xf32, #tpu.memory_space<vmem>>, vector<1x4x256xf32>
    tpu.vector_store %arg6[%c0_7, %c0_8, %c0_9], %13 {strides = array<i32>} : memref<1x4x256xf32, #tpu.memory_space<vmem>>, vector<1x4x256xf32>,
    return
  }
  func.func @transform_0(%arg0: i32, %arg1: i32, %arg2: i32) -> (i32, i32, i32) {
    %c0_i32 = arith.constant 0 : i32
    return %arg1, %arg0, %arg2 : i32, i32, i32
  }
  func.func @transform_1(%arg0: i32, %arg1: i32, %arg2: i32) -> (i32, i32) {
    %c0_i32 = arith.constant 0 : i32
    %c0_i32_0 = arith.constant 0 : i32
    return %arg0, %c0_i32 : i32, i32
  }
  func.func @transform_2(%arg0: i32, %arg1: i32, %arg2: i32) -> (i32, i32) {
    %c0_i32 = arith.constant 0 : i32
    %c0_i32_0 = arith.constant 0 : i32
    return %arg0, %c0_i32 : i32, i32
  }
  func.func @transform_3(%arg0: i32, %arg1: i32, %arg2: i32) -> (i32, i32, i32) {
    %c0_i32 = arith.constant 0 : i32
    return %arg1, %arg0, %arg2 : i32, i32, i32
  }
}

</mosaic_0001>

<bundles_post_ra>
// kernel: inplace_abn_sync.2
= control target key start
LH: loop header
LB: loop body
LE: loop exit
PB: predicated region body
PF: predicated region fallthrough
CT: control target
= control target key end

     0   :  { %s460_s9 = smov 0   ;;  %s462_s10 = smov 0   ;;  %s528_s0 = inlined_call_operand.vmem [shape: f32[2,4,256], index: 0, kind: input, shape index: {}]   ;;  %s529_s1 = inlined_call_operand.vmem [shape: f32[4,1], index: 1, kind: output, shape index: {0}]   ;;  %s530_s2 = inlined_call_operand.vmem [shape: f32[4,1], index: 2, kind: output, shape index: {1}]  }
   0x1   :  { %s464_s11 = smov 0  }
   0x2 LB: > { %s28_s12 = sadd.s32 1, %s437_s10  ;;  %p378_p0 = scmp.ge.s32.totalorder %s441_s11, 1  ;;  %s441_s11 = sphi %s464_s11, %s13_s11   ;;  %s437_s10 = sphi %s462_s10, %s532_s10   ;;  %s433_s9 = sphi %s460_s9, %s531_s9  }
   0x3   : > { %p30_p1 = scmp.ge.s32.totalorder %s28_s12, 2  ;;  %p147_p2 = scmp.lt.s32.totalorder %s441_s11, 3 }
   0x5   : > { %s534_s12 = smov (%p30_p1, %s28_s12), 0  ;;  %p148_p3 = pnand %p378_p0, %p147_p2 }
   0x6   : > { %p181_p4 = scmp.lt.s32.totalorder (!%p148_p3), %s433_s9, 1  ;;  %p381_p5 = scmp.ne.s32.totalorder (!%p148_p3), %s433_s9, 0 }
   0x7   : > { %151 = sbr.rel (%p148_p3) target bundleno = 340 (0x154), region = 24 }
   0xe   : > { %s182_s13 = scalar_select %p181_p4, %s433_s9, 1 }
   0xf   : > { %206 = sbr.rel (%p381_p5) target bundleno = 22 (0x16), region = 28  ;;  %vm207_vm0 = vcmask (!%p381_p5), 3072   ;;  %v443_v0 = vmov (!%p381_p5), 0.0  }
  0x10   : > { %s387_s14 = sshll.u32 %s182_s13, 3  ;;  %208 = vst.msk [vmem:[%s529_s1] sm:$0xf] (!%p381_p5), %vm207_vm0, %v443_v0  ;;  %209 = vst.msk [vmem:[%s530_s2] sm:$0xf] (!%p381_p5), %vm207_vm0, %v443_v0 }
  0x11   : > { %s192_s17 = scalar_lea.vmem %s528_s0, %s387_s14 }
  0x16 PF: > { %v210_v1 = vld [vmem:[%s192_s17] sm:$0xff]  ;;  %vm214_vm1 = vcmask 1043456   ;;  %s240_s22 = scvt.s32.f32 %s433_s9  ;;  %v444_v8 = vmov 839922192   ;;  %v225_v10 = vlaneseq  ;;  %vm252_vm2 = vcmask 3072   ;;  %p382_p6 = scmp.ne.s32.totalorder %s433_s9, 1 }
  0x17   : > { %v212_v2 = vcombine.high %v210_v1, %v210_v1  ;;  %v215_v3 = vsel %vm214_vm1, %v210_v1, 0.0  ;;  %v223_v9 = vunpack.c.l.s4 %v444_v8  ;;  %v243_v14 = vld [vmem:[%s529_s1] sm:$0xf] }
  0x18   : > { %s241_s23 = smul.f32 256.0, %s240_s22  ;;  %v226_v12 = vshrl.u32 %v225_v10, 7  ;;  %v254_v31 = vld [vmem:[%s530_s2] sm:$0xf] }
  0x19   : > { %v216_v4 = vsel %vm214_vm1, %v212_v2, 0.0  ;;  %v224_v11 = vunpack.c.0.s8 %v223_v9 }
  0x1a   : > { %v217_v5 = vadd.f32 %v216_v4, %v215_v3  ;;  %s242_s24 = sadd.f32 256.0, %s241_s23  ;;  %s257_s25 = smul.f32 256.0, %s241_s23 }
  0x1b   : > { %v227_v13 = vsub.s32 %v224_v11, %v226_v12 }
  0x1c   : > { %218 = vadd.xlane.f32.xlu0 %v217_v5  ;;  %v245_v6 = vstv %s242_s24 }
  0x1d   : > { %417 = vrcp.f32 %v245_v6 }
  0x27   : > { %v418_v7 = vpop.eup %417 }
  0x28   : > { %388 = vpush %v418_v7 }
  0x59   : > { %s389_s26 = spop %388 }
  0x5a   : > { %s261_s27 = smul.f32 %s389_s26, %s257_s25 }
  0x5b   : > { %s248_s28 = smul.f32 256.0, %s389_s26 }
  0x5c   : > { %v262_v20 = vstv %s261_s27 }
  0x5d   : > { %v249_v17 = vstv %s248_s28 }
  0xa9   : > { %v219_v15 = vpop.xlane.xlu0 %218 }
  0xaa   : > { %v220_v16 = vmul.f32 0.00390625, %v219_v15 }
  0xac   : > { %v228_v18 = vrot.slane %v220_v16, %v227_v13  ;;  %v244_v19 = vsub.f32 %v220_v16, %v243_v14 }
  0xae   : > { %v230_v21 = vsub.f32 %v210_v1, %v228_v18  ;;  %v250_v22 = vmul.f32 %v249_v17, %v244_v19  ;;  %v256_v23 = vmul.f32 %v244_v19, %v244_v19 }
  0xb0   : > { %v251_v24 = vadd.f32 %v250_v22, %v243_v14  ;;  %v263_v25 = vmul.f32 %v262_v20, %v256_v23  ;;  %v231_v26 = vmul.f32 %v230_v21, %v230_v21 }
  0xb2   : > { %v233_v27 = vcombine.high %v231_v26, %v231_v26  ;;  %253 = vst.msk [vmem:[%s529_s1] sm:$0xf] %vm252_vm2, %v251_v24  ;;  %v235_v28 = vsel %vm214_vm1, %v231_v26, 0.0 }
  0xb4   : > { %v236_v29 = vsel %vm214_vm1, %v233_v27, 0.0 }
  0xb5   : > { %v237_v30 = vadd.f32 %v236_v29, %v235_v28 }
  0xb7   : > { %238 = vadd.xlane.f32.xlu0 %v237_v30 }
 0x143   : > { %269 = sbr.rel (%p382_p6) target bundleno = 340 (0x154), region = 32 }
 0x144   : > { %v239_v32 = vpop.xlane.xlu0 %238 }
 0x145   : > { %v255_v33 = vadd.f32 %v254_v31, %v239_v32 }
 0x147   : > { %v264_v34 = vadd.f32 %v263_v25, %v255_v33 }
 0x149   : > { %265 = vst.msk [vmem:[%s530_s2] sm:$0xf] %vm252_vm2, %v264_v34 }
 0x150   : > { %v270_v35 = vld [vmem:[%s530_s2] sm:$0xf] }
 0x151   : > { %v271_v36 = vmul.f32 0.001953125, %v270_v35 }
 0x153   : > { %272 = vst.msk [vmem:[%s530_s2] sm:$0xf] %vm252_vm2, %v271_v36 }
 0x154 PF: > { %s13_s11 = sadd.s32 1, %s441_s11   ;;  %s531_s9 = smov %s437_s10 }
 0x155   : > { %p10_p7 = scmp.ge.s32.totalorder %s13_s11, 4   ;;  %s532_s10 = smov %s534_s12 }
 0x157   :  { %12 = sbr.rel (!%p10_p7) target bundleno = 2 (0x2), region = 74 }

// kernel: inplace_abn_sync.3
= control target key start
LH: loop header
LB: loop body
LE: loop exit
PB: predicated region body
PF: predicated region fallthrough
CT: control target
= control target key end

     0   :  { %s538_s12 = smov 0   ;;  %s540_s13 = smov 0   ;;  %s577_s0 = inlined_call_operand.vmem [shape: f32[2,4,256], index: 0, kind: input, shape index: {}, may-alias: {0,3}]   ;;  %s578_s1 = inlined_call_operand.vmem [shape: f32[4,1], index: 1, kind: input, shape index: {}]   ;;  %s579_s2 = inlined_call_operand.vmem [shape: f32[4,1], index: 2, kind: input, shape index: {}]   ;;  %s580_s3 = inlined_call_operand.vmem [shape: f32[2,4,256], index: 3, kind: output, shape index: {}, may-alias: {0,3}]  }
   0x1   :  { %s542_s14 = smov 0  }
   0x2 LB: > { %s28_s15 = sadd.s32 1, %s510_s13  ;;  %p456_p0 = scmp.ge.s32.totalorder %s514_s14, 1  ;;  %s514_s14 = sphi %s542_s14, %s13_s14   ;;  %s510_s13 = sphi %s540_s13, %s582_s13   ;;  %s506_s12 = sphi %s538_s12, %s581_s12  }
   0x3   : > { %p30_p1 = scmp.ge.s32.totalorder %s28_s15, 2  ;;  %p191_p2 = scmp.lt.s32.totalorder %s514_s14, 3 }
   0x5   : > { %s584_s15 = smov (%p30_p1, %s28_s15), 0  ;;  %p192_p3 = pnand %p456_p0, %p191_p2 }
   0x6   : > { %v276_v0 = vld [vmem:[%s578_s1] sm:$0xf] (!%p192_p3)  ;;  %v516_v1 = vmov (!%p192_p3), 0   ;;  %p240_p4 = scmp.lt.s32.totalorder (!%p192_p3), %s506_s12, 1  ;;  %v517_v3 = vmov (!%p192_p3), 839922192   ;;  %v285_v5 = vlaneseq (!%p192_p3) }
   0x7   : > { %195 = sbr.rel (%p192_p3) target bundleno = 148 (0x94), region = 32  ;;  %491 = vset.pattern.permute.xlu0 (!%p192_p3), %v516_v1  ;;  %v277_v2 = vld [vmem:[%s579_s2] sm:$0xf] (!%p192_p3)  ;;  %v283_v4 = vunpack.c.l.s4 (!%p192_p3), %v517_v3 }
   0x8   : > { %280 = vperm.xlu0 (!%p192_p3), %491, %v276_v0   ;;  %v286_v7 = vshrl.u32 (!%p192_p3), %v285_v5, 7 }
   0x9   : > { %v284_v6 = vunpack.c.0.s8 (!%p192_p3), %v283_v4 }
   0xb   : > { %v287_v8 = vsub.s32 (!%p192_p3), %v284_v6, %v286_v7 }
   0xc   : > { %293 = vperm.xlu0 (!%p192_p3), %491, %v277_v2  }
   0xe   : > { %s586_s12 = smov (!%p240_p4, %s506_s12), 1 }
   0xf   : > { %s463_s20 = sshll.u32 %s586_s12, 3 }
  0x10   : > { %s251_s23 = scalar_lea.vmem %s577_s0, %s463_s20  ;;  %s273_s26 = scalar_lea.vmem %s580_s3, %s463_s20 }
  0x11   : > { %v275_v11 = vld [vmem:[%s251_s23] sm:$0xff] }
  0x87   : > { %v281_v9 = vpop.permute.xlu0 %280 }
  0x88   : > { %v288_v10 = vrot.slane %v281_v9, %v287_v8 }
  0x8a   : > { %v290_v13 = vmul.f32 %v288_v10, %v275_v11 }
  0x8b   : > { %v294_v12 = vpop.permute.xlu0 %293 }
  0x8c   : > { %v301_v14 = vrot.slane %v294_v12, %v287_v8 }
  0x8e   : > { %v303_v15 = vadd.f32 %v301_v14, %v290_v13 }
  0x90   : > { %vm304_vm0 = vcmp.ge.f32.partialorder %v303_v15, 0.0  ;;  %v305_v16 = vmul.f32 0.01, %v303_v15 }
  0x92   : > { %v306_v17 = vsel %vm304_vm0, %v303_v15, %v305_v16 }
  0x93   : > { %307 = vst [vmem:[%s273_s26] sm:$0xff] %v306_v17 }
  0x94 PF: > { %s13_s14 = sadd.s32 1, %s514_s14   ;;  %s581_s12 = smov %s510_s13 }
  0x95   : > { %p10_p5 = scmp.ge.s32.totalorder %s13_s14, 4   ;;  %s582_s13 = smov %s584_s15 }
  0x97   :  { %12 = sbr.rel (!%p10_p5) target bundleno = 2 (0x2), region = 68 }

</bundles_post_ra>
